<compile_context>
chip_gen: v7x
topology: tpu7x:2x2x1
jax: 0.10.0
libtpu: 0.0.40
codegen_flags: <defaults>
</compile_context>

<pallas_src>
import jax
import jax.numpy as jnp
from jax import lax
from jax.experimental import pallas as pl
from jax.experimental.pallas import tpu as pltpu

NUM_BLUR = 21            # num_blurred_version
KS = 3                   # self.ks
HALF_KS = (KS + 1) // 2  # = 2 learnable taps per kernel


def _reflect_laplacian(n):
    """(n, n) matrix L with (L @ v)[j] = v[reflect(j-1)] + v[reflect(j+1)] - 2*v[j],
    reflect padding of width 1 (requires n >= 2)."""
    idx = jnp.arange(n)
    left = jnp.abs(idx - 1)                    # reflect(j-1)
    right = (n - 1) - jnp.abs((n - 2) - idx)   # reflect(j+1)
    eye = jnp.eye(n, dtype=jnp.float32)
    return eye[left] + eye[right] - 2.0 * eye


def _full_rkr_kernel(p_ref, x_ref, lhb_ref, lwt_ref, o_ref, cur_ref):
    # p_ref  : SMEM (NUM_BLUR, 3) f32      per-(stage, channel) blur weight p
    # x_ref  : (1, 3H, W)   input slab (channels stacked along sublanes), resident per batch
    # lhb_ref: (3H, 3H)     block-diag vertical reflect Laplacian (left-multiply)
    # lwt_ref: (W, W)       horizontal reflect Laplacian, transposed (right-multiply)
    # o_ref  : (1, 1, 3H, W) output slab for this (batch, stage)
    # cur_ref: VMEM scratch (3H, W) f32, persists across the stage grid axis
    t = pl.program_id(1)
    three_h = cur_ref.shape[0]
    h = three_h // 3

    @pl.when(t == 0)
    def _():
        x = x_ref[0].astype(jnp.float32)
        cur_ref[...] = x
        o_ref[0, 0] = x.astype(o_ref.dtype)

    @pl.when(t > 0)
    def _():
        s = t - 1
        p0 = p_ref[s, 0]
        p1 = p_ref[s, 1]
        p2 = p_ref[s, 2]
        row = lax.broadcasted_iota(jnp.int32, (three_h, 1), 0)
        pcol = jnp.where(row < h, p0, jnp.where(row < 2 * h, p1, p2))   # (3H, 1)

        cur = cur_ref[...]
        # horizontal reflect 3-tap conv:  y = cur + p * (cur @ L_W^T)
        y = cur + pcol * jnp.dot(cur, lwt_ref[...],
                                 preferred_element_type=jnp.float32)
        # vertical reflect 3-tap conv:    z = y + p * (blockdiag(L_H) @ y)
        z = y + pcol * jnp.dot(lhb_ref[...], y,
                               preferred_element_type=jnp.float32)
        cur_ref[...] = z
        o_ref[0, 0] = z.astype(o_ref.dtype)


def full_rkr(x, kernels, dilation=1):
    """x: (N, 3, H, W) f32, kernels: (3*NUM_BLUR, 2) f32 (== torch kernels[:, 0, 0, :])."""
    # TODO(synk): only dilation=1 (the default) is supported; dilation>1 changes pad width.
    assert dilation == 1
    N, C, H, W = x.shape
    assert C == 3
    n_stages = NUM_BLUR + 1
    out_c = 3 * n_stages

    # --- parameter setup (glue, plain JAX) ---
    # reflect-pad last dim: [a, b] -> [a, b, a], softmax -> taps [p, 1-2p, p].
    taps = jax.nn.softmax(
        jnp.stack([kernels[:, 0], kernels[:, 1], kernels[:, 0]], axis=1), axis=1)
    pmat = taps[:, 0].reshape(NUM_BLUR, 3).astype(jnp.float32)       # 63 scalars -> SMEM

    l_h = _reflect_laplacian(H)                                      # (H, H)
    lhb = jnp.kron(jnp.eye(3, dtype=jnp.float32), l_h)               # (3H, 3H) block-diag
    lwt = _reflect_laplacian(W).T                                    # (W, W) right-multiply

    x_slab = x.reshape(N, 3 * H, W)                                  # free bitcast (NCHW kept)

    # Explicit VMEM budget (matters on v7x's 64 MiB / 32 MiB-default scoped VMEM):
    # 2x-buffered matrices + input slab + output slab, plus persistent scratch.
    slab = 3 * H * W * 4
    vmem_needed = 2 * 4 * (9 * H * H + W * W) + 2 * slab + 2 * slab + slab + (2 << 20)
    vmem_limit = int(min(vmem_needed, 100 << 20)) if vmem_needed > (30 << 20) else None

    cost = pl.CostEstimate(
        flops=int(N * NUM_BLUR * (6 * H * W * W + 18 * H * H * W + 12 * H * W)),
        transcendentals=0,
        bytes_accessed=int(4 * (N * 3 * H * W + N * out_c * H * W
                                + 9 * H * H + W * W + NUM_BLUR * 3)),
    )

    out = pl.pallas_call(
        _full_rkr_kernel,
        out_shape=jax.ShapeDtypeStruct((N, n_stages, 3 * H, W), x.dtype),
        grid_spec=pltpu.PrefetchScalarGridSpec(
            num_scalar_prefetch=1,
            grid=(N, n_stages),
            in_specs=[
                pl.BlockSpec((1, 3 * H, W), lambda b, t, p: (b, 0, 0)),   # resident per batch
                pl.BlockSpec((3 * H, 3 * H), lambda b, t, p: (0, 0)),     # shared, fetched once
                pl.BlockSpec((W, W), lambda b, t, p: (0, 0)),             # shared, fetched once
            ],
            out_specs=pl.BlockSpec((1, 1, 3 * H, W), lambda b, t, p: (b, t, 0, 0)),
            scratch_shapes=[pltpu.VMEM((3 * H, W), jnp.float32)],
        ),
        compiler_params=pltpu.CompilerParams(
            dimension_semantics=("parallel", "arbitrary"),
            vmem_limit_bytes=vmem_limit,
        ),
        cost_estimate=cost,
    )(pmat, x_slab, lhb, lwt)

    return out.reshape(N, out_c, H, W)                               # free bitcast back to NCHW


def full_rkr_reference(x, kernels):
    """Pure-JAX reference mirroring the PyTorch forward (pad-reflect + two grouped convs)."""
    taps = jax.nn.softmax(
        jnp.stack([kernels[:, 0], kernels[:, 1], kernels[:, 0]], axis=1), axis=1)
    dn = ('NCHW', 'OIHW', 'NCHW')
    res = [x]
    cur = x
    for t in range(NUM_BLUR):
        kt = taps[3 * t:3 * t + 3]
        pad = jnp.pad(cur, ((0, 0), (0, 0), (1, 1), (1, 1)), mode='reflect')
        cx = jax.lax.conv_general_dilated(pad, kt.reshape(3, 1, 1, 3), (1, 1), 'VALID',
                                          feature_group_count=3, dimension_numbers=dn)
        cur = jax.lax.conv_general_dilated(cx, kt.reshape(3, 1, 3, 1), (1, 1), 'VALID',
                                           feature_group_count=3, dimension_numbers=dn)
        res.append(cur)
    return jnp.concatenate(res, axis=1)


if __name__ == "__main__":
    key = jax.random.PRNGKey(0)
    kx, kk = jax.random.split(key)
    N, C, H, W = 2, 3, 16, 16
    x = jax.random.normal(kx, (N, C, H, W), dtype=jnp.float32)
    # deterministic stand-in for torch.rand(63, 1, 1, 2)
    kernels = jax.random.uniform(kk, (3 * NUM_BLUR, HALF_KS), dtype=jnp.float32)

    out = full_rkr(x, kernels)
    out = jax.block_until_ready(out)

    ref = full_rkr_reference(x, kernels)
    assert out.shape == (N, 3 * (NUM_BLUR + 1), H, W)
    assert jnp.allclose(out, ref, atol=1e-4, rtol=1e-4), float(jnp.max(jnp.abs(out - ref)))
    print("KERNEL_OK")
</pallas_src>

<mosaic_0001>
module attributes {stable_mosaic.version = 11 : i64} {
  func.func @_full_rkr_kernel(%arg0: i32, %arg1: i32, %arg2: memref<21x3xf32, #tpu.memory_space<smem>>, %arg3: memref<1x48x16xf32, #tpu.memory_space<vmem>>, %arg4: memref<48x48xf32, #tpu.memory_space<vmem>>, %arg5: memref<16x16xf32, #tpu.memory_space<vmem>>, %arg6: memref<1x1x48x16xf32, #tpu.memory_space<vmem>>, %arg7: memref<48x16xf32, #tpu.memory_space<vmem>>) attributes {dimension_semantics = [#tpu.dimension_semantics<parallel>, #tpu.dimension_semantics<arbitrary>], iteration_bounds = array<i64: 2, 22>, scalar_prefetch = 1 : i64, scratch_operands = 1 : i64, tpu.core_type = #tpu.core_type<tc>, window_params = [{transform_indices = @transform_0, window_bounds = array<i64: 1, 48, 16>}, {pipeline_mode = #tpu.pipeline_mode<synchronous>, transform_indices = @transform_1, window_bounds = array<i64: 48, 48>}, {pipeline_mode = #tpu.pipeline_mode<synchronous>, transform_indices = @transform_2, window_bounds = array<i64: 16, 16>}, {transform_indices = @transform_3, window_bounds = array<i64: 1, 1, 48, 16>}]} {
    %c0_i32 = arith.constant 0 : i32
    %0 = arith.cmpi eq, %arg1, %c0_i32 : i32
    %1 = arith.extui %0 : i1 to i32
    %c0_i32_0 = arith.constant 0 : i32
    %2 = arith.cmpi ne, %1, %c0_i32_0 : i32
    scf.if %2 {
      %c0 = arith.constant 0 : index
      %c0_3 = arith.constant 0 : index
      %c0_4 = arith.constant 0 : index
      %6 = vector.load %arg3[%c0, %c0_3, %c0_4] : memref<1x48x16xf32, #tpu.memory_space<vmem>>, vector<1x48x16xf32>
      %7 = vector.shape_cast %6 : vector<1x48x16xf32> to vector<48x16xf32>
      %c0_5 = arith.constant 0 : index
      %c0_6 = arith.constant 0 : index
      %8 = vector.load %arg7[%c0_5, %c0_6] : memref<48x16xf32, #tpu.memory_space<vmem>>, vector<48x16xf32>
      tpu.vector_store %arg7[%c0_5, %c0_6], %7 {strides = array<i32>} : memref<48x16xf32, #tpu.memory_space<vmem>>, vector<48x16xf32>,
      %c0_7 = arith.constant 0 : index
      %c0_8 = arith.constant 0 : index
      %c0_9 = arith.constant 0 : index
      %c0_10 = arith.constant 0 : index
      %9 = vector.load %arg6[%c0_7, %c0_8, %c0_9, %c0_10] : memref<1x1x48x16xf32, #tpu.memory_space<vmem>>, vector<1x1x48x16xf32>
      %10 = vector.shape_cast %9 : vector<1x1x48x16xf32> to vector<48x16xf32>
      %11 = vector.shape_cast %7 : vector<48x16xf32> to vector<1x1x48x16xf32>
      tpu.vector_store %arg6[%c0_7, %c0_8, %c0_9, %c0_10], %11 {strides = array<i32>} : memref<1x1x48x16xf32, #tpu.memory_space<vmem>>, vector<1x1x48x16xf32>,
    } else {
    }
    %c0_i32_1 = arith.constant 0 : i32
    %3 = arith.cmpi sgt, %arg1, %c0_i32_1 : i32
    %4 = arith.extui %3 : i1 to i32
    %c0_i32_2 = arith.constant 0 : i32
    %5 = arith.cmpi ne, %4, %c0_i32_2 : i32
    scf.if %5 {
      %c1_i32 = arith.constant 1 : i32
      %6 = arith.subi %arg1, %c1_i32 : i32
      %7 = arith.index_cast %6 : i32 to index
      %c0 = arith.constant 0 : index
      %8 = memref.load %arg2[%7, %c0] : memref<21x3xf32, #tpu.memory_space<smem>>
      %9 = arith.index_cast %6 : i32 to index
      %c1 = arith.constant 1 : index
      %10 = memref.load %arg2[%9, %c1] : memref<21x3xf32, #tpu.memory_space<smem>>
      %11 = arith.index_cast %6 : i32 to index
      %c2 = arith.constant 2 : index
      %12 = memref.load %arg2[%11, %c2] : memref<21x3xf32, #tpu.memory_space<smem>>
      %13 = tpu.iota {dimensions = array<i32: 0>} : vector<48x1xi32>
      %c16_i32 = arith.constant 16 : i32
      %14 = vector.broadcast %c16_i32 : i32 to vector<48x1xi32>
      %15 = arith.cmpi slt, %13, %14 : vector<48x1xi32>
      %c32_i32 = arith.constant 32 : i32
      %16 = vector.broadcast %c32_i32 : i32 to vector<48x1xi32>
      %17 = arith.cmpi slt, %13, %16 : vector<48x1xi32>
      %18 = vector.broadcast %10 : f32 to vector<48x1xf32>
      %19 = vector.broadcast %12 : f32 to vector<48x1xf32>
      %20 = arith.select %17, %18, %19 : vector<48x1xi1>, vector<48x1xf32>
      %21 = vector.broadcast %8 : f32 to vector<48x1xf32>
      %22 = arith.select %15, %21, %20 : vector<48x1xi1>, vector<48x1xf32>
      %c0_3 = arith.constant 0 : index
      %c0_4 = arith.constant 0 : index
      %23 = vector.load %arg7[%c0_3, %c0_4] : memref<48x16xf32, #tpu.memory_space<vmem>>, vector<48x16xf32>
      %c0_5 = arith.constant 0 : index
      %c0_6 = arith.constant 0 : index
      %24 = vector.load %arg5[%c0_5, %c0_6] : memref<16x16xf32, #tpu.memory_space<vmem>>, vector<16x16xf32>
      %cst = arith.constant dense<0.000000e+00> : vector<48x16xf32>
      %25 = tpu.matmul %23, %24, %cst {dimension_numbers = #tpu.dot_dimension_numbers<[1], [0], [0], [1], [0, 0, 1, 1], [], []>} : vector<48x16xf32>, vector<16x16xf32>, vector<48x16xf32> -> vector<48x16xf32>
      %26 = vector.broadcast %22 : vector<48x1xf32> to vector<48x16xf32>
      %27 = arith.mulf %26, %25 : vector<48x16xf32>
      %28 = arith.addf %23, %27 : vector<48x16xf32>
      %c0_7 = arith.constant 0 : index
      %c0_8 = arith.constant 0 : index
      %29 = vector.load %arg4[%c0_7, %c0_8] : memref<48x48xf32, #tpu.memory_space<vmem>>, vector<48x48xf32>
      %cst_9 = arith.constant dense<0.000000e+00> : vector<48x16xf32>
      %30 = tpu.matmul %29, %28, %cst_9 {dimension_numbers = #tpu.dot_dimension_numbers<[1], [0], [0], [1], [0, 0, 1, 1], [], []>} : vector<48x48xf32>, vector<48x16xf32>, vector<48x16xf32> -> vector<48x16xf32>
      %31 = vector.broadcast %22 : vector<48x1xf32> to vector<48x16xf32>
      %32 = arith.mulf %31, %30 : vector<48x16xf32>
      %33 = arith.addf %28, %32 : vector<48x16xf32>
      %c0_10 = arith.constant 0 : index
      %c0_11 = arith.constant 0 : index
      %34 = vector.load %arg7[%c0_10, %c0_11] : memref<48x16xf32, #tpu.memory_space<vmem>>, vector<48x16xf32>
      tpu.vector_store %arg7[%c0_10, %c0_11], %33 {strides = array<i32>} : memref<48x16xf32, #tpu.memory_space<vmem>>, vector<48x16xf32>,
      %c0_12 = arith.constant 0 : index
      %c0_13 = arith.constant 0 : index
      %c0_14 = arith.constant 0 : index
      %c0_15 = arith.constant 0 : index
      %35 = vector.load %arg6[%c0_12, %c0_13, %c0_14, %c0_15] : memref<1x1x48x16xf32, #tpu.memory_space<vmem>>, vector<1x1x48x16xf32>
      %36 = vector.shape_cast %35 : vector<1x1x48x16xf32> to vector<48x16xf32>
      %37 = vector.shape_cast %33 : vector<48x16xf32> to vector<1x1x48x16xf32>
      tpu.vector_store %arg6[%c0_12, %c0_13, %c0_14, %c0_15], %37 {strides = array<i32>} : memref<1x1x48x16xf32, #tpu.memory_space<vmem>>, vector<1x1x48x16xf32>,
    } else {
    }
    return
  }
  func.func @transform_0(%arg0: i32, %arg1: i32, %arg2: memref<21x3xf32, #tpu.memory_space<smem>>) -> (i32, i32, i32) {
    %c0_i32 = arith.constant 0 : i32
    %c0_i32_0 = arith.constant 0 : i32
    %c0_i32_1 = arith.constant 0 : i32
    return %arg0, %c0_i32, %c0_i32_0 : i32, i32, i32
  }
  func.func @transform_1(%arg0: i32, %arg1: i32, %arg2: memref<21x3xf32, #tpu.memory_space<smem>>) -> (i32, i32) {
    %c0_i32 = arith.constant 0 : i32
    %c0_i32_0 = arith.constant 0 : i32
    %c0_i32_1 = arith.constant 0 : i32
    return %c0_i32, %c0_i32_0 : i32, i32
  }
  func.func @transform_2(%arg0: i32, %arg1: i32, %arg2: memref<21x3xf32, #tpu.memory_space<smem>>) -> (i32, i32) {
    %c0_i32 = arith.constant 0 : i32
    %c0_i32_0 = arith.constant 0 : i32
    %c0_i32_1 = arith.constant 0 : i32
    return %c0_i32, %c0_i32_0 : i32, i32
  }
  func.func @transform_3(%arg0: i32, %arg1: i32, %arg2: memref<21x3xf32, #tpu.memory_space<smem>>) -> (i32, i32, i32, i32) {
    %c0_i32 = arith.constant 0 : i32
    %c0_i32_0 = arith.constant 0 : i32
    %c0_i32_1 = arith.constant 0 : i32
    return %arg0, %arg1, %c0_i32, %c0_i32_0 : i32, i32, i32, i32
  }
}

</mosaic_0001>

<bundles_post_ra>
// kernel: tpu_custom_call.1
= control target key start
LH: loop header
LB: loop body
LE: loop exit
PB: predicated region body
PF: predicated region fallthrough
CT: control target
= control target key end

     0   :  { %s1189_s0 = inlined_call_operand.vmem [shape: f32[21,3], index: 0, kind: input, shape index: {}]   ;;  %s1190_s1 = inlined_call_operand.vmem [shape: f32[2,48,16], index: 1, kind: input, shape index: {}]   ;;  %s1191_s2 = inlined_call_operand.hbm [shape: f32[48,48], index: 2, kind: input, shape index: {}]   ;;  %s1192_s3 = inlined_call_operand.hbm [shape: f32[16,16], index: 3, kind: input, shape index: {}]   ;;  %s1193_s4 = inlined_call_operand.vmem [shape: f32[2,22,48,16], index: 4, kind: output, shape index: {}]  }
   0x1   :  { %s9_s17 = sshll.u32 %s1189_s0, 4  ;;  %s10_s17 = int_to_ptr.vmem [resolvable:$true] %s9_s17 }
   0x2   :  { %s857_s18 = scalar_lea.vmem %s10_s17, 384  ;;  %p862_p1 = scmp.lt.s32.totalorder %s10_s17, %s10_s17 }
   0x3   :  { %p858_p0 = scmp.ne.s32.totalorder %s10_s17, %s857_s18  ;;  %p863_p2 = scmp.lt.s32.totalorder %s857_s18, %s857_s18 }
   0x5   :  { %p864_p3 = por %p863_p2, %p862_p1 }
   0x7   :  { %p865_p4 = pnand %p864_p3, %p858_p0 }
   0x9   :  { %868 = shalt.err (!%p865_p4)  }
   0xa   :  { %s975_s19 = smov [#allocation4]  }
   0xb   :  { %12 = dma.vmem_to_smem %s10_s17, 384, %s975_s19, [#allocation3] }
   0xc   :  { %945 = dma.done.wait [#allocation3], 384 }
   0xd   :  { %946 = vsyncadd [#allocation3], 4294966912 }
   0xe   :  { %14 = sfence }
   0xf   :  { %15 = vsyncpa [#allocation6], 0 }
  0x10   :  { %16 = vsyncpa [#allocation8], 0  ;;  %s1008_s20 = smov 0   ;;  %s1010_s21 = smov 0  }
  0x11   :  { %s1012_s0 = smov 0   ;;  %s1014_s22 = smov 0  }
  0x12   :  { %s1016_s23 = smov 0  }
  0x13 LB: > { %s685_s24 = sadd.s32 4294967295, %s973_s23   ;;  %s31_s25 = sadd.s32 1, %s965_s0  ;;  %s973_s23 = sphi %s1016_s23, %s22_s23   ;;  %s969_s22 = sphi %s1014_s22, %s1205_s22   ;;  %s965_s0 = sphi %s1012_s0, %s1204_s0   ;;  %s961_s21 = sphi %s1010_s21, %s1203_s21   ;;  %s957_s20 = sphi %s1008_s20, %s1202_s20  }
  0x14   : > { %p32_p5 = scmp.ge.s32.totalorder %s31_s25, 22  ;;  %s34_s26 = sadd.s32 1, %s969_s22 }
  0x15   : > { %p687_p6 = scmp.ge.s32.totalorder %s973_s23, 1  ;;  %p135_p7 = scmp.lt.s32.totalorder %s973_s23, 45 }
  0x16   : > { %s1207_s25 = smov (%p32_p5, %s31_s25), 0  ;;  %s1209_s26 = smov (!%p32_p5, %s34_s26), %s969_s22 }
  0x17   : > { %p1041_p8 = pnand %p687_p6, %p135_p7  ;;  %p36_p9 = scmp.ge.s32.totalorder %s1209_s26, 2 }
  0x18   : > { %p1045_p10 = scmp.eq.s32.totalorder %s685_s24, 0  ;;  %s976_s29 = smov [#allocation5]  }
  0x19   : > { %s1197_s27 = scalar_select %p1041_p8, 1, 0 }
  0x1a   : > { %s1198_s28 = scalar_select %p1045_p10, 1, 0 }
  0x1b   : > { %p801_p11 = pneg %p1041_p8  ;;  %s1211_s26 = smov (%p36_p9, %s1209_s26), 0 }
  0x1c   : > { %s147_s30 = sshll.u32 %s976_s29, 4  ;;  %s869_s8 = scalar_lea.hbm %s1191_s2, 768  ;;  %s148_s30 = int_to_ptr.vmem [resolvable:$true] %s147_s30 }
  0x1d   : > { %p1055_p12 = pnand %p1045_p10, %p801_p11  ;;  %p870_p13 = scmp.ne.s32.totalorder %s1191_s2, %s869_s8 }
  0x1e   : > { %p876_p3 = scmp.lt.u32.totalorder %s869_s8, %s1191_s2 }
  0x1f   : > { %p871_p0 = pneg %p1055_p12 }
  0x21   : > { %p872_p1 = pnand %p871_p0, %p870_p13 }
  0x23   : > { %p873_p2 = pneg %p872_p1 }
  0x25   : > { %p878_p4 = pnand %p876_p3, %p873_p2 }
  0x27   : > { %881 = shalt.err (!%p878_p4)
}
  0x28   : > { %s882_s13 = scalar_lea.vmem %s148_s30, 768  ;;  %p890_p9 = scmp.lt.s32.totalorder %s148_s30, %s148_s30 }
  0x29   : > { %p883_p5 = scmp.ne.s32.totalorder %s148_s30, %s882_s13  ;;  %p891_p11 = scmp.lt.s32.totalorder %s882_s13, %s882_s13 }
  0x2b   : > { %p885_p6 = pnand %p883_p5, %p871_p0  ;;  %p892_p10 = por %p891_p11, %p890_p9 }
  0x2d   : > { %p886_p7 = pneg %p885_p6 }
  0x2f   : > { %p893_p8 = pnand %p892_p10, %p886_p7 }
  0x31   : > { %896 = shalt.err (!%p893_p8)
}
  0x32   : > { %s977_s14 = smov 128   ;;  %s978_s15 = smov 8  }
  0x33   : > { %804 = dma.hbm_to_vmem [thread:$0]  (!%p1055_p12), %s1191_s2, 768, %s148_s30, [#allocation6], %s977_s14, %s977_s14, %s978_s15  }
  0x34   : > { %s979_s18 = smov [#allocation7]   ;;  %s897_s6 = scalar_lea.hbm %s1192_s3, 256 }
  0x35   : > { %s160_s19 = sshll.u32 %s979_s18, 4  ;;  %p898_p8 = scmp.ne.s32.totalorder %s1192_s3, %s897_s6  ;;  %s161_s19 = int_to_ptr.vmem [resolvable:$true] %s160_s19 }
  0x36   : > { %p904_p1 = scmp.lt.u32.totalorder %s897_s6, %s1192_s3 }
  0x37   : > { %p900_p10 = pnand %p898_p8, %p871_p0 }
  0x39   : > { %p901_p13 = pneg %p900_p10 }
  0x3b   : > { %p906_p2 = pnand %p904_p1, %p901_p13 }
  0x3d   : > { %909 = shalt.err (!%p906_p2)
}
  0x3e   : > { %s910_s30 = scalar_lea.vmem %s161_s19, 256  ;;  %p918_p6 = scmp.lt.s32.totalorder %s161_s19, %s161_s19 }
  0x3f   : > { %p911_p3 = scmp.ne.s32.totalorder %s161_s19, %s910_s30  ;;  %p919_p7 = scmp.lt.s32.totalorder %s910_s30, %s910_s30 }
  0x41   : > { %p913_p4 = pnand %p911_p3, %p871_p0  ;;  %p920_p9 = por %p919_p7, %p918_p6 }
  0x43   : > { %p914_p5 = pneg %p913_p4 }
  0x45   : > { %p921_p11 = pnand %p920_p9, %p914_p5 }
  0x47   : > { %924 = shalt.err (!%p921_p11)
}
  0x48   : > { %807 = dma.hbm_to_vmem [thread:$0]  (!%p1055_p12), %s1192_s3, 256, %s161_s19, [#allocation8], %s977_s14, %s977_s14, %s978_s15  }
  0x49   : > { %p1200_p8 = scmp.ne.s32.totalorder %s1197_s27, 0 }
  0x4a   : > { %p1201_p10 = scmp.ne.s32.totalorder (!%p1200_p8), %s1198_s28, 0 }
  0x4b   : > { %184 = sbr.rel (%p1200_p8) target bundleno = 560 (0x230), region = 32 }
  0x52   : > { %948 = dma.done.wait (%p1201_p10), [#allocation6], 768  }
  0x53   : > { %950 = vsyncadd (%p1201_p10), [#allocation6], 4294966528 }
  0x54   : > { %952 = dma.done.wait (%p1201_p10), [#allocation8], 256  }
  0x55   : > { %954 = vsyncadd (%p1201_p10), [#allocation8], 4294967040  ;;  %p216_p12 = scmp.lt.s32.totalorder %s961_s21, 1  ;;  %p223_p0 = scmp.lt.s32.totalorder %s957_s20, 21 }
  0x56   : > { %p696_p13 = scmp.ne.s32.totalorder %s957_s20, 0 }
  0x57   : > { %s1213_s21 = smov (!%p216_p12, %s961_s21), 1  ;;  %vm240_vm0 = vcmask (!%p696_p13), 130048  }
  0x58   : > { %s224_s27 = scalar_select %p223_p0, %s957_s20, 21 }
  0x59   : > { %s790_s5 = smul.u32 48, %s1213_s21 }
  0x5a   : > { %s791_s13 = smul.u32 6, %s224_s27 }
  0x5b   : > { %s220_s16 = scalar_lea.vmem %s1190_s1, %s790_s5  ;;  %s792_s17 = smul.u32 132, %s1213_s21 }
  0x5c   : > { %233 = sbr.rel (%p696_p13) target bundleno = 99 (0x63), region = 44  ;;  %v234_v0 = vld [vmem:[%s220_s16] sm:$0xff] (!%p696_p13)  ;;  %v235_v1 = vld [vmem:[%s220_s16 + $0x8] sm:$0xff] (!%p696_p13)  ;;  %v236_v2 = vld [vmem:[%s220_s16 + $0x10] sm:$0xff] (!%p696_p13) }
  0x5d   : > { %s227_s18 = sadd.s32 %s792_s17, %s791_s13  ;;  %241 = vst.msk [vmem:[#allocation2] sm:$0xff] (!%p696_p13), %vm240_vm0, %v234_v0  ;;  %242 = vst.msk [vmem:[#allocation2 + $0x8] sm:$0xff] (!%p696_p13), %vm240_vm0, %v235_v1  ;;  %v237_v3 = vld [vmem:[%s220_s16 + $0x18] sm:$0xff] (!%p696_p13)  ;;  %v238_v4 = vld [vmem:[%s220_s16 + $0x20] sm:$0xff] (!%p696_p13) }
  0x5e   : > { %s695_s19 = sshll.u32 %s227_s18, 3  ;;  %243 = vst.msk [vmem:[#allocation2 + $0x10] sm:$0xff] (!%p696_p13), %vm240_vm0, %v236_v2  ;;  %v239_v5 = vld [vmem:[%s220_s16 + $0x28] sm:$0xff] (!%p696_p13)  ;;  %244 = vst.msk [vmem:[#allocation2 + $0x18] sm:$0xff] (!%p696_p13), %vm240_vm0, %v237_v3 }
  0x5f   : > { %s1121_s29 = scalar_lea.vmem %s1193_s4, %s695_s19  ;;  %245 = vst.msk [vmem:[#allocation2 + $0x20] sm:$0xff] (!%p696_p13), %vm240_vm0, %v238_v4  ;;  %246 = vst.msk [vmem:[#allocation2 + $0x28] sm:$0xff] (!%p696_p13), %vm240_vm0, %v239_v5 }
  0x60   : > { %247 = vst.msk [vmem:[%s1121_s29] sm:$0xff] (!%p696_p13), %vm240_vm0, %v234_v0  ;;  %248 = vst.msk [vmem:[%s1121_s29 + $0x8] sm:$0xff] (!%p696_p13), %vm240_vm0, %v235_v1 }
  0x61   : > { %249 = vst.msk [vmem:[%s1121_s29 + $0x10] sm:$0xff] (!%p696_p13), %vm240_vm0, %v236_v2  ;;  %250 = vst.msk [vmem:[%s1121_s29 + $0x18] sm:$0xff] (!%p696_p13), %vm240_vm0, %v237_v3 }
  0x62   : > { %251 = vst.msk [vmem:[%s1121_s29 + $0x20] sm:$0xff] (!%p696_p13), %vm240_vm0, %v238_v4  ;;  %252 = vst.msk [vmem:[%s1121_s29 + $0x28] sm:$0xff] (!%p696_p13), %vm240_vm0, %v239_v5 }
  0x63 PF: > { %p697_p1 = scmp.le.s32.totalorder %s957_s20, 0 }
  0x64   : > { %v304_v6 = vld [vmem:[#allocation7] sm:$0xff] (!%p697_p1)  ;;  %v305_v7 = vld [vmem:[#allocation7 + $0x8] sm:$0xff] (!%p697_p1)  ;;  %vm306_vm1 = vcmask (!%p697_p1), 130048   ;;  %v432_v15 = vld [vmem:[#allocation5] sm:$0xff] (!%p697_p1)  ;;  %vm438_vm2 = vcmask (!%p697_p1), 392192   ;;  %s698_s21 = sadd.s32 (!%p697_p1), 4294967295, %s957_s20 }
  0x65   : > { %256 = sbr.rel (%p697_p1) target bundleno = 560 (0x230), region = 48  ;;  %v298_v8 = vld [vmem:[#allocation2] sm:$0xff] (!%p697_p1)  ;;  %v768_v9 = vpack.c.bf16 (!%p697_p1), %v305_v7, %v304_v6  ;;  %v299_v10 = vld [vmem:[#allocation2 + $0x8] sm:$0xff] (!%p697_p1)  ;;  %v300_v11 = vld [vmem:[#allocation2 + $0x10] sm:$0xff] (!%p697_p1)  ;;  %s699_s6 = sshll.u32 (!%p697_p1), %s698_s21, 7 }
  0x66   : > { %738 = vmatprep.mubr.msk.f32.mxu0 (!%p697_p1), %vm306_vm1, %v298_v8  ;;  %v301_v12 = vld [vmem:[#allocation2 + $0x18] sm:$0xff] (!%p697_p1)  ;;  %v302_v13 = vld [vmem:[#allocation2 + $0x20] sm:$0xff] (!%p697_p1)  ;;  %v303_v14 = vld [vmem:[#allocation2 + $0x28] sm:$0xff] (!%p697_p1)  ;;  %s259_s7 = sld [smem:[#allocation4 + %s699_s6]] (!%p697_p1)  ;;  %s260_s8 = sadd.s32 (!%p697_p1), 1, %s699_s6 }
  0x67   : > { %769 = vmatprep.subr.bf16.mxu0 (!%p697_p1), %v768_v9  ;;  %v434_v16 = vld [vmem:[#allocation5 + $0x10] sm:$0xff] (!%p697_p1)  ;;  %s261_s9 = sld [smem:[#allocation4 + %s260_s8]] (!%p697_p1)  ;;  %s262_s10 = sadd.s32 (!%p697_p1), 2, %s699_s6  ;;  %v433_v41 = vld [vmem:[#allocation5 + $0x8] sm:$0xff] (!%p697_p1)  ;;  %v435_v42 = vld [vmem:[#allocation5 + $0x18] sm:$0xff] (!%p697_p1) }
  0x68   : > { %771 = vmatpush3.bf16.msra.mxu0 (!%p697_p1), %v768_v9  ;;  %762 = vmatprep.mubr.msk.f32.mxu1 (!%p697_p1), %vm438_vm2, %v434_v16  ;;  %s263_s30 = sld [smem:[#allocation4 + %s262_s10]] (!%p697_p1)  ;;  %v436_v43 = vld [vmem:[#allocation5 + $0x20] sm:$0xff] (!%p697_p1)  ;;  %v437_v44 = vld [vmem:[#allocation5 + $0x28] sm:$0xff] (!%p697_p1) }
  0x6b   : > { %739 = vmatmul.mubr.msk.f32.vlgmr.msra.gmra.mrb[0].mxu0 (!%p697_p1), %vm306_vm1, %v299_v10 }
  0x6c   : > { %741 = vmatprep.mubr.msk.f32.mxu0 %vm306_vm1, %v300_v11  ;;  %v291_v17 = vstv %s259_s7 }
  0x6d   : > { %v283_v22 = vstv %s261_s9 }
  0x6e   : > { %v284_v30 = vstv %s263_s30 }
  0x6f   : > { %742 = vmatmul.mubr.msk.f32.gmra.mrb[2].mxu0 %vm306_vm1, %v301_v12 }
  0x70   : > { %744 = vmatprep.mubr.msk.f32.mxu0 %vm306_vm1, %v302_v13 }
  0x73   : > { %745 = vmatmul.mubr.msk.f32.gmra.mrb[4].mxu0 %vm306_vm1, %v303_v14 }
  0x74   : > { %759 = vmatprep.mubr.msk.f32.mxu0 %vm438_vm2, %v432_v15 }
 0x13e   : > { %v740_v18 = vpop.f32.mrb[0].mxu0 }
 0x13f   : > { %v421_v19 = vmul.f32 %v740_v18, %v291_v17  ;;  %v391_v20 = vpop.f32.mrb[1].mxu0 }
 0x140   : > { %v420_v21 = vmul.f32 %v391_v20, %v291_v17 }
 0x141   : > { %v427_v23 = vadd.f32 %v421_v19, %v299_v10 }
 0x142   : > { %v426_v24 = vadd.f32 %v420_v21, %v298_v8  ;;  %v743_v25 = vpop.f32.mrb[2].mxu0 }
 0x143   : > { %v423_v26 = vmul.f32 %v743_v25, %v283_v22  ;;  %v401_v27 = vpop.f32.mrb[3].mxu0 }
 0x144   : > { %v772_v28 = vpack.c.bf16 %v427_v23, %v426_v24  ;;  %v422_v29 = vmul.f32 %v401_v27, %v283_v22 }
 0x145   : > { %v429_v31 = vadd.f32 %v423_v26, %v301_v12 }
 0x146   : > { %v428_v32 = vadd.f32 %v422_v29, %v300_v11  ;;  %v746_v33 = vpop.f32.mrb[4].mxu0  ;;  %773 = vmatprep.subr.bf16.mxu0 %v772_v28  ;;  %784 = vmatprep.subr.bf16.mxu1 %v772_v28 }
 0x147   : > { %v425_v34 = vmul.f32 %v746_v33, %v284_v30  ;;  %v411_v35 = vpop.f32.mrb[5].mxu0  ;;  %775 = vmatpush3.bf16.msra.mxu0 %v772_v28  ;;  %787 = vmatpush3.bf16.msra.mxu1 %v772_v28 }
 0x148   : > { %v776_v36 = vpack.c.bf16 %v429_v31, %v428_v32  ;;  %v424_v37 = vmul.f32 %v411_v35, %v284_v30 }
 0x149   : > { %v431_v38 = vadd.f32 %v425_v34, %v303_v14 }
 0x14a   : > { %v430_v39 = vadd.f32 %v424_v37, %v302_v13  ;;  %777 = vmatprep.subr.bf16.mxu0 %v776_v36  ;;  %785 = vmatprep.subr.bf16.mxu1 %v776_v36 }
 0x14b   : > { %779 = vmatpush3.bf16.msra.mxu0 %v776_v36  ;;  %788 = vmatpush3.bf16.msra.mxu1 %v776_v36 }
 0x14c   : > { %v780_v40 = vpack.c.bf16 %v431_v38, %v430_v39 }
 0x14e   : > { %781 = vmatprep.subr.bf16.mxu0 %v780_v40  ;;  %786 = vmatprep.subr.bf16.mxu1 %v780_v40 }
 0x14f   : > { %783 = vmatpush3.bf16.msra.mxu0 %v780_v40  ;;  %789 = vmatpush3.bf16.msra.mxu1 %v780_v40 }
 0x152   : > { %760 = vmatmul.mubr.msk.f32.vlgmr.msra.gmra.mrb[6].mxu0 %vm438_vm2, %v433_v41  ;;  %763 = vmatmul.mubr.msk.f32.vlgmr.msra.gmra.mrb[0].mxu1 %vm438_vm2, %v435_v42 }
 0x153   : > { %765 = vmatprep.mubr.msk.f32.mxu1 %vm438_vm2, %v436_v43 }
 0x156   : > { %766 = vmatmul.mubr.msk.f32.gmra.mrb[2].mxu1 %vm438_vm2, %v437_v44 }
 0x225   : > { %v761_v45 = vpop.f32.mrb[6].mxu0  ;;  %v764_v46 = vpop.f32.mrb[0].mxu1 }
 0x226   : > { %v553_v47 = vmul.f32 %v761_v45, %v291_v17  ;;  %v555_v48 = vmul.f32 %v764_v46, %v283_v22  ;;  %v523_v49 = vpop.f32.mrb[7].mxu0  ;;  %v533_v50 = vpop.f32.mrb[1].mxu1 }
 0x227   : > { %v552_v51 = vmul.f32 %v523_v49, %v291_v17  ;;  %v554_v52 = vmul.f32 %v533_v50, %v283_v22 }
 0x228   : > { %v559_v53 = vadd.f32 %v553_v47, %v427_v23  ;;  %v561_v54 = vadd.f32 %v555_v48, %v429_v31 }
 0x229   : > { %v558_v55 = vadd.f32 %v552_v51, %v426_v24  ;;  %v560_v56 = vadd.f32 %v554_v52, %v428_v32  ;;  %v767_v57 = vpop.f32.mrb[2].mxu1 }
 0x22a   : > { %565 = vst.msk [vmem:[#allocation2 + $0x8] sm:$0xff] %vm306_vm1, %v559_v53  ;;  %571 = vst.msk [vmem:[%s1121_s29 + $0x8] sm:$0xff] %vm306_vm1, %v559_v53  ;;  %v557_v58 = vmul.f32 %v767_v57, %v284_v30  ;;  %v543_v59 = vpop.f32.mrb[3].mxu1 }
 0x22b   : > { %567 = vst.msk [vmem:[#allocation2 + $0x18] sm:$0xff] %vm306_vm1, %v561_v54  ;;  %573 = vst.msk [vmem:[%s1121_s29 + $0x18] sm:$0xff] %vm306_vm1, %v561_v54  ;;  %v556_v60 = vmul.f32 %v543_v59, %v284_v30 }
 0x22c   : > { %564 = vst.msk [vmem:[#allocation2] sm:$0xff] %vm306_vm1, %v558_v55  ;;  %570 = vst.msk [vmem:[%s1121_s29] sm:$0xff] %vm306_vm1, %v558_v55  ;;  %v563_v61 = vadd.f32 %v557_v58, %v431_v38 }
 0x22d   : > { %566 = vst.msk [vmem:[#allocation2 + $0x10] sm:$0xff] %vm306_vm1, %v560_v56  ;;  %572 = vst.msk [vmem:[%s1121_s29 + $0x10] sm:$0xff] %vm306_vm1, %v560_v56  ;;  %v562_v62 = vadd.f32 %v556_v60, %v430_v39 }
 0x22e   : > { %569 = vst.msk [vmem:[#allocation2 + $0x28] sm:$0xff] %vm306_vm1, %v563_v61  ;;  %575 = vst.msk [vmem:[%s1121_s29 + $0x28] sm:$0xff] %vm306_vm1, %v563_v61 }
 0x22f   : > { %568 = vst.msk [vmem:[#allocation2 + $0x20] sm:$0xff] %vm306_vm1, %v562_v62  ;;  %574 = vst.msk [vmem:[%s1121_s29 + $0x20] sm:$0xff] %vm306_vm1, %v562_v62 }
 0x230 PF: > { %s22_s23 = sadd.s32 1, %s973_s23   ;;  %s1202_s20 = smov %s965_s0 }
 0x231   : > { %p19_p2 = scmp.ge.s32.totalorder %s22_s23, 46   ;;  %s1203_s21 = smov %s969_s22 }
 0x232   : > { %s1204_s0 = smov %s1207_s25  ;;  %s1205_s22 = smov %s1211_s26 }
 0x233   :  { %21 = sbr.rel (!%p19_p2) target bundleno = 19 (0x13), region = 79 }
 0x23a   :  { %605 = vsyncpa [#allocation6], 1 }
 0x23b   :  { %607 = vsyncpa [#allocation6 + $0x1], 1 }
 0x23c   :  { %608 = vsyncpa [#allocation8], 1 }

</bundles_post_ra>
